<compile_context>
chip_gen: v5e
topology: v5e:2x2
jax: 0.10.0
libtpu: 0.0.40
codegen_flags: <defaults>
</compile_context>

<pallas_src>
import functools

import jax
import jax.numpy as jnp
from jax.experimental import pallas as pl
from jax.experimental.pallas import tpu as pltpu


LANE = 128


def _round_up(v, m):
    return (v + m - 1) // m * m


def _pad2(a, rows, cols):
    return jnp.pad(a, ((0, rows - a.shape[0]), (0, cols - a.shape[1])))


# ---------------------------------------------------------------------------
# Kernel: one GCN layer,  out = relu((A @ X) @ W + b)
# grid = (row tiles of A, K-reduction over A's columns)
# ---------------------------------------------------------------------------
def gcn_layer_kernel(a_ref, x_ref, w_ref, b_ref, out_ref, acc_ref):
    k = pl.program_id(1)

    @pl.when(k == 0)
    def _init():
        acc_ref[...] = jnp.zeros_like(acc_ref)

    # (tile_n, tile_n) bf16 @ (tile_n, Din) bf16 -> f32 accumulate (MXU)
    acc_ref[...] += jnp.dot(a_ref[...], x_ref[...],
                            preferred_element_type=jnp.float32)

    @pl.when(k == pl.num_programs(1) - 1)
    def _finalize():
        ax = acc_ref[...].astype(jnp.bfloat16)                     # (tile_n, Din)
        h = jnp.dot(ax, w_ref[...],
                    preferred_element_type=jnp.float32) + b_ref[...]
        out_ref[...] = jnp.maximum(h, 0.0).astype(out_ref.dtype)


def gcn_layer(a_p, x_p, w_p, b_p, *, tile_n):
    n_p = a_p.shape[0]
    din = x_p.shape[1]
    h = w_p.shape[1]
    n_row_tiles = n_p // tile_n
    grid = (n_row_tiles, n_p // tile_n)
    flops = 2 * n_p * n_p * din + 2 * n_p * din * h
    bytes_accessed = 2 * (a_p.size + x_p.size * n_row_tiles + w_p.size
                          + n_p * h) + 4 * b_p.size
    return pl.pallas_call(
        gcn_layer_kernel,
        out_shape=jax.ShapeDtypeStruct((n_p, h), jnp.bfloat16),
        grid_spec=pltpu.PrefetchScalarGridSpec(
            num_scalar_prefetch=0,
            grid=grid,
            in_specs=[
                pl.BlockSpec((tile_n, tile_n), lambda i, k: (i, k)),   # A
                pl.BlockSpec((tile_n, din), lambda i, k: (k, 0)),      # X
                pl.BlockSpec((din, h), lambda i, k: (0, 0)),           # W
                pl.BlockSpec((1, h), lambda i, k: (0, 0)),             # b
            ],
            out_specs=pl.BlockSpec((tile_n, h), lambda i, k: (i, 0)),
            scratch_shapes=[pltpu.VMEM((tile_n, din), jnp.float32)],
        ),
        compiler_params=pltpu.CompilerParams(
            dimension_semantics=("parallel", "arbitrary"),
            vmem_limit_bytes=32 * 1024 * 1024,
        ),
        cost_estimate=pl.CostEstimate(flops=flops, transcendentals=0,
                                      bytes_accessed=bytes_accessed),
    )(a_p, x_p, w_p, b_p)


# ---------------------------------------------------------------------------
# Kernel: mean pool + output head,  y = (pool @ H) @ Wout + bout
# grid = (K-reduction over node tiles,)
# ---------------------------------------------------------------------------
def pool_head_kernel(p_ref, h_ref, wo_ref, bo_ref, out_ref, acc_ref):
    k = pl.program_id(0)

    @pl.when(k == 0)
    def _init():
        acc_ref[...] = jnp.zeros_like(acc_ref)

    acc_ref[...] += jnp.dot(p_ref[...], h_ref[...],
                            preferred_element_type=jnp.float32)

    @pl.when(k == pl.num_programs(0) - 1)
    def _finalize():
        pooled = acc_ref[...].astype(jnp.bfloat16)                  # (G, H)
        y = jnp.dot(pooled, wo_ref[...],
                    preferred_element_type=jnp.float32) + bo_ref[...]
        out_ref[...] = y.astype(out_ref.dtype)


def pool_head(pool_p, h_p, wo_p, bo_p, *, tile_n):
    g_p, n_p = pool_p.shape
    hdim = h_p.shape[1]
    c_p = wo_p.shape[1]
    grid = (n_p // tile_n,)
    flops = 2 * g_p * n_p * hdim + 2 * g_p * hdim * c_p
    bytes_accessed = 2 * (pool_p.size + h_p.size + wo_p.size) + 4 * (bo_p.size + g_p * c_p)
    return pl.pallas_call(
        pool_head_kernel,
        out_shape=jax.ShapeDtypeStruct((g_p, c_p), jnp.float32),
        grid_spec=pltpu.PrefetchScalarGridSpec(
            num_scalar_prefetch=0,
            grid=grid,
            in_specs=[
                pl.BlockSpec((g_p, tile_n), lambda k: (0, k)),         # pool
                pl.BlockSpec((tile_n, hdim), lambda k: (k, 0)),        # H
                pl.BlockSpec((hdim, c_p), lambda k: (0, 0)),           # Wout
                pl.BlockSpec((1, c_p), lambda k: (0, 0)),              # bout
            ],
            out_specs=pl.BlockSpec((g_p, c_p), lambda k: (0, 0)),
            scratch_shapes=[pltpu.VMEM((g_p, hdim), jnp.float32)],
        ),
        compiler_params=pltpu.CompilerParams(
            dimension_semantics=("arbitrary",),
            vmem_limit_bytes=32 * 1024 * 1024,
        ),
        cost_estimate=pl.CostEstimate(flops=flops, transcendentals=0,
                                      bytes_accessed=bytes_accessed),
    )(pool_p, h_p, wo_p, bo_p)


# ---------------------------------------------------------------------------
# Top-level forward: pad + cast in the wrapper, run the three kernels, slice.
# ---------------------------------------------------------------------------
@functools.partial(jax.jit, static_argnames=("tile_n",))
def basegraph_forward(a_norm, x, w1, b1, w2, b2, pool, wo, bo, *, tile_n=256):
    n, f = x.shape
    hdim = w1.shape[1]
    g = pool.shape[0]
    c = wo.shape[1]

    n_p = _round_up(n, tile_n)
    f_p = _round_up(f, LANE)
    h_p = _round_up(hdim, LANE)
    c_p = _round_up(c, LANE)
    g_p = _round_up(g, 8)

    bf16 = jnp.bfloat16
    a_p = _pad2(a_norm, n_p, n_p).astype(bf16)
    x_p = _pad2(x, n_p, f_p).astype(bf16)
    w1_p = _pad2(w1, f_p, h_p).astype(bf16)
    b1_p = _pad2(b1, 1, h_p).astype(jnp.float32)
    w2_p = _pad2(w2, h_p, h_p).astype(bf16)
    b2_p = _pad2(b2, 1, h_p).astype(jnp.float32)
    pool_p = _pad2(pool, g_p, n_p).astype(bf16)
    wo_p = _pad2(wo, h_p, c_p).astype(bf16)
    bo_p = _pad2(bo, 1, c_p).astype(jnp.float32)

    h1 = gcn_layer(a_p, x_p, w1_p, b1_p, tile_n=tile_n)    # (n_p, h_p) bf16
    h2 = gcn_layer(a_p, h1, w2_p, b2_p, tile_n=tile_n)     # (n_p, h_p) bf16
    y = pool_head(pool_p, h2, wo_p, bo_p, tile_n=tile_n)   # (g_p, c_p) f32
    return y[:g, :c]


# ---------------------------------------------------------------------------
# Glue (plain JAX): GCN-normalized adjacency, pooling matrix, parameter init.
# ---------------------------------------------------------------------------
def gcn_normalized_adjacency(edge_index, num_nodes):
    """A_norm = D^-1/2 (A + I) D^-1/2, messages flow src -> dst (PyG GCNConv)."""
    src, dst = edge_index[0], edge_index[1]
    adj = jnp.zeros((num_nodes, num_nodes), jnp.float32)
    adj = adj.at[dst, src].set(1.0)                       # A[i, j] = 1 if j -> i
    adj = adj + jnp.eye(num_nodes, dtype=jnp.float32)     # add self-loops
    deg = jnp.sum(adj, axis=1)                            # degree incl. self-loop
    dinv = jnp.where(deg > 0, 1.0 / jnp.sqrt(deg), 0.0)
    return dinv[:, None] * adj * dinv[None, :]


def mean_pool_matrix(batch, num_graphs):
    onehot = (batch[None, :] == jnp.arange(num_graphs)[:, None]).astype(jnp.float32)
    counts = jnp.maximum(jnp.sum(onehot, axis=1, keepdims=True), 1.0)
    return onehot / counts                                # (G, N)


def init_params(key, in_feat, hidden_dim, num_class):
    k1, k2, k3 = jax.random.split(key, 3)

    def glorot(k, shape):
        fan_in, fan_out = shape
        lim = jnp.sqrt(6.0 / (fan_in + fan_out))
        return jax.random.uniform(k, shape, jnp.float32, -lim, lim)

    w1 = glorot(k1, (in_feat, hidden_dim))
    b1 = jnp.zeros((1, hidden_dim), jnp.float32)
    w2 = glorot(k2, (hidden_dim, hidden_dim))
    b2 = jnp.zeros((1, hidden_dim), jnp.float32)
    wo = glorot(k3, (hidden_dim, num_class))
    bo = jnp.zeros((1, num_class), jnp.float32)
    return w1, b1, w2, b2, wo, bo


def reference_forward(a_norm, x, w1, b1, w2, b2, pool, wo, bo):
    h = jnp.maximum(a_norm @ (x @ w1) + b1, 0.0)
    h = jnp.maximum(a_norm @ (h @ w2) + b2, 0.0)
    return (pool @ h) @ wo + bo


if __name__ == "__main__":
    # Small shapes: 16 nodes, in_feat=8, hidden=32, 4 classes, 2 graphs.
    N, IN_FEAT, HIDDEN, NUM_CLASS, NUM_GRAPHS = 16, 8, 32, 4, 2

    key = jax.random.PRNGKey(0)
    kx, ke, kp = jax.random.split(key, 3)

    # Node features
    x = jax.random.normal(kx, (N, IN_FEAT), jnp.float32)

    # Deterministic edge set: a ring over all nodes plus a few random edges,
    # stored as undirected (both directions) like typical PyG datasets.
    ring_src = jnp.arange(N)
    ring_dst = (jnp.arange(N) + 1) % N
    extra_src = jax.random.randint(ke, (8,), 0, N)
    extra_dst = jax.random.randint(jax.random.fold_in(ke, 1), (8,), 0, N)
    src = jnp.concatenate([ring_src, ring_dst, extra_src, extra_dst])
    dst = jnp.concatenate([ring_dst, ring_src, extra_dst, extra_src])
    edge_index = jnp.stack([src, dst], axis=0)            # (2, E)

    # Batch vector: first half of nodes -> graph 0, second half -> graph 1.
    batch = jnp.concatenate([jnp.zeros(N // 2, jnp.int32),
                             jnp.ones(N - N // 2, jnp.int32)])

    a_norm = gcn_normalized_adjacency(edge_index, N)
    pool = mean_pool_matrix(batch, NUM_GRAPHS)
    w1, b1, w2, b2, wo, bo = init_params(kp, IN_FEAT, HIDDEN, NUM_CLASS)

    out = basegraph_forward(a_norm, x, w1, b1, w2, b2, pool, wo, bo)
    out = jax.block_until_ready(out)

    # f32 reference; kernel uses bf16 MXU operands with f32 accumulation, so
    # compare with a bf16-appropriate tolerance.
    ref = reference_forward(a_norm, x, w1, b1, w2, b2, pool, wo, bo)
    assert out.shape == (NUM_GRAPHS, NUM_CLASS)
    assert jnp.allclose(out, ref, atol=5e-2, rtol=5e-2), (
        f"max abs err {jnp.max(jnp.abs(out - ref))}")

    print("KERNEL_OK")
</pallas_src>

<mosaic_0001>
module attributes {stable_mosaic.version = 11 : i64} {
  func.func @gcn_layer_kernel(%arg0: i32, %arg1: i32, %arg2: memref<256x256xbf16, #tpu.memory_space<vmem>>, %arg3: memref<256x128xbf16, #tpu.memory_space<vmem>>, %arg4: memref<128x128xbf16, #tpu.memory_space<vmem>>, %arg5: memref<1x128xf32, #tpu.memory_space<vmem>>, %arg6: memref<256x128xbf16, #tpu.memory_space<vmem>>, %arg7: memref<256x128xf32, #tpu.memory_space<vmem>>) attributes {dimension_semantics = [#tpu.dimension_semantics<parallel>, #tpu.dimension_semantics<arbitrary>], iteration_bounds = array<i64: 1, 1>, scalar_prefetch = 0 : i64, scratch_operands = 1 : i64, tpu.core_type = #tpu.core_type<tc>, window_params = [{transform_indices = @transform_0, window_bounds = array<i64: 256, 256>}, {transform_indices = @transform_1, window_bounds = array<i64: 256, 128>}, {pipeline_mode = #tpu.pipeline_mode<synchronous>, transform_indices = @transform_2, window_bounds = array<i64: 128, 128>}, {pipeline_mode = #tpu.pipeline_mode<synchronous>, transform_indices = @transform_3, window_bounds = array<i64: 1, 128>}, {transform_indices = @transform_4, window_bounds = array<i64: 256, 128>}]} {
    %c0_i32 = arith.constant 0 : i32
    %0 = arith.cmpi eq, %arg1, %c0_i32 : i32
    %1 = arith.extui %0 : i1 to i32
    %c0_i32_0 = arith.constant 0 : i32
    %2 = arith.cmpi ne, %1, %c0_i32_0 : i32
    scf.if %2 {
      %cst_10 = arith.constant 0.000000e+00 : f32
      %12 = vector.broadcast %cst_10 : f32 to vector<256x128xf32>
      %c0_11 = arith.constant 0 : index
      %c0_12 = arith.constant 0 : index
      %13 = vector.load %arg7[%c0_11, %c0_12] : memref<256x128xf32, #tpu.memory_space<vmem>>, vector<256x128xf32>
      tpu.vector_store %arg7[%c0_11, %c0_12], %12 {strides = array<i32>} : memref<256x128xf32, #tpu.memory_space<vmem>>, vector<256x128xf32>,
    } else {
    }
    %c0 = arith.constant 0 : index
    %c0_1 = arith.constant 0 : index
    %3 = vector.load %arg7[%c0, %c0_1] : memref<256x128xf32, #tpu.memory_space<vmem>>, vector<256x128xf32>
    %c0_2 = arith.constant 0 : index
    %c0_3 = arith.constant 0 : index
    %4 = vector.load %arg2[%c0_2, %c0_3] : memref<256x256xbf16, #tpu.memory_space<vmem>>, vector<256x256xbf16>
    %c0_4 = arith.constant 0 : index
    %c0_5 = arith.constant 0 : index
    %5 = vector.load %arg3[%c0_4, %c0_5] : memref<256x128xbf16, #tpu.memory_space<vmem>>, vector<256x128xbf16>
    %cst = arith.constant dense<0.000000e+00> : vector<256x128xf32>
    %6 = tpu.matmul %4, %5, %cst {dimension_numbers = #tpu.dot_dimension_numbers<[1], [0], [0], [1], [0, 0, 1, 1], [], []>} : vector<256x256xbf16>, vector<256x128xbf16>, vector<256x128xf32> -> vector<256x128xf32>
    %7 = arith.addf %3, %6 : vector<256x128xf32>
    %c0_6 = arith.constant 0 : index
    %c0_7 = arith.constant 0 : index
    %8 = vector.load %arg7[%c0_6, %c0_7] : memref<256x128xf32, #tpu.memory_space<vmem>>, vector<256x128xf32>
    tpu.vector_store %arg7[%c0_6, %c0_7], %7 {strides = array<i32>} : memref<256x128xf32, #tpu.memory_space<vmem>>, vector<256x128xf32>,
    %c0_i32_8 = arith.constant 0 : i32
    %9 = arith.cmpi eq, %arg1, %c0_i32_8 : i32
    %10 = arith.extui %9 : i1 to i32
    %c0_i32_9 = arith.constant 0 : i32
    %11 = arith.cmpi ne, %10, %c0_i32_9 : i32
    scf.if %11 {
      %c0_10 = arith.constant 0 : index
      %c0_11 = arith.constant 0 : index
      %12 = vector.load %arg7[%c0_10, %c0_11] : memref<256x128xf32, #tpu.memory_space<vmem>>, vector<256x128xf32>
      %13 = arith.truncf %12 : vector<256x128xf32> to vector<256x128xbf16>
      %c0_12 = arith.constant 0 : index
      %c0_13 = arith.constant 0 : index
      %14 = vector.load %arg4[%c0_12, %c0_13] : memref<128x128xbf16, #tpu.memory_space<vmem>>, vector<128x128xbf16>
      %cst_14 = arith.constant dense<0.000000e+00> : vector<256x128xf32>
      %15 = tpu.matmul %13, %14, %cst_14 {dimension_numbers = #tpu.dot_dimension_numbers<[1], [0], [0], [1], [0, 0, 1, 1], [], []>} : vector<256x128xbf16>, vector<128x128xbf16>, vector<256x128xf32> -> vector<256x128xf32>
      %c0_15 = arith.constant 0 : index
      %c0_16 = arith.constant 0 : index
      %16 = vector.load %arg5[%c0_15, %c0_16] : memref<1x128xf32, #tpu.memory_space<vmem>>, vector<1x128xf32>
      %17 = vector.broadcast %16 : vector<1x128xf32> to vector<256x128xf32>
      %18 = arith.addf %15, %17 : vector<256x128xf32>
      %cst_17 = arith.constant 0.000000e+00 : f32
      %19 = vector.broadcast %cst_17 : f32 to vector<256x128xf32>
      %20 = arith.maximumf %18, %19 : vector<256x128xf32>
      %21 = arith.truncf %20 : vector<256x128xf32> to vector<256x128xbf16>
      %c0_18 = arith.constant 0 : index
      %c0_19 = arith.constant 0 : index
      %22 = vector.load %arg6[%c0_18, %c0_19] : memref<256x128xbf16, #tpu.memory_space<vmem>>, vector<256x128xbf16>
      tpu.vector_store %arg6[%c0_18, %c0_19], %21 {strides = array<i32>} : memref<256x128xbf16, #tpu.memory_space<vmem>>, vector<256x128xbf16>,
    } else {
    }
    return
  }
  func.func @transform_0(%arg0: i32, %arg1: i32) -> (i32, i32) {
    %c0_i32 = arith.constant 0 : i32
    return %arg0, %arg1 : i32, i32
  }
  func.func @transform_1(%arg0: i32, %arg1: i32) -> (i32, i32) {
    %c0_i32 = arith.constant 0 : i32
    %c0_i32_0 = arith.constant 0 : i32
    return %arg1, %c0_i32 : i32, i32
  }
  func.func @transform_2(%arg0: i32, %arg1: i32) -> (i32, i32) {
    %c0_i32 = arith.constant 0 : i32
    %c0_i32_0 = arith.constant 0 : i32
    %c0_i32_1 = arith.constant 0 : i32
    return %c0_i32, %c0_i32_0 : i32, i32
  }
  func.func @transform_3(%arg0: i32, %arg1: i32) -> (i32, i32) {
    %c0_i32 = arith.constant 0 : i32
    %c0_i32_0 = arith.constant 0 : i32
    %c0_i32_1 = arith.constant 0 : i32
    return %c0_i32, %c0_i32_0 : i32, i32
  }
  func.func @transform_4(%arg0: i32, %arg1: i32) -> (i32, i32) {
    %c0_i32 = arith.constant 0 : i32
    %c0_i32_0 = arith.constant 0 : i32
    return %arg0, %c0_i32 : i32, i32
  }
}

module attributes {stable_mosaic.version = 11 : i64} {
  func.func @pool_head_kernel(%arg0: i32, %arg1: memref<8x256xbf16, #tpu.memory_space<vmem>>, %arg2: memref<256x128xbf16, #tpu.memory_space<vmem>>, %arg3: memref<128x128xbf16, #tpu.memory_space<vmem>>, %arg4: memref<1x128xf32, #tpu.memory_space<vmem>>, %arg5: memref<8x128xf32, #tpu.memory_space<vmem>>, %arg6: memref<8x128xf32, #tpu.memory_space<vmem>>) attributes {dimension_semantics = [#tpu.dimension_semantics<arbitrary>], iteration_bounds = array<i64: 1>, scalar_prefetch = 0 : i64, scratch_operands = 1 : i64, tpu.core_type = #tpu.core_type<tc>, window_params = [{transform_indices = @transform_0, window_bounds = array<i64: 8, 256>}, {transform_indices = @transform_1, window_bounds = array<i64: 256, 128>}, {pipeline_mode = #tpu.pipeline_mode<synchronous>, transform_indices = @transform_2, window_bounds = array<i64: 128, 128>}, {pipeline_mode = #tpu.pipeline_mode<synchronous>, transform_indices = @transform_3, window_bounds = array<i64: 1, 128>}, {pipeline_mode = #tpu.pipeline_mode<synchronous>, transform_indices = @transform_4, window_bounds = array<i64: 8, 128>}]} {
    %c0_i32 = arith.constant 0 : i32
    %0 = arith.cmpi eq, %arg0, %c0_i32 : i32
    %1 = arith.extui %0 : i1 to i32
    %c0_i32_0 = arith.constant 0 : i32
    %2 = arith.cmpi ne, %1, %c0_i32_0 : i32
    scf.if %2 {
      %cst_10 = arith.constant 0.000000e+00 : f32
      %12 = vector.broadcast %cst_10 : f32 to vector<8x128xf32>
      %c0_11 = arith.constant 0 : index
      %c0_12 = arith.constant 0 : index
      %13 = vector.load %arg6[%c0_11, %c0_12] : memref<8x128xf32, #tpu.memory_space<vmem>>, vector<8x128xf32>
      tpu.vector_store %arg6[%c0_11, %c0_12], %12 {strides = array<i32>} : memref<8x128xf32, #tpu.memory_space<vmem>>, vector<8x128xf32>,
    } else {
    }
    %c0 = arith.constant 0 : index
    %c0_1 = arith.constant 0 : index
    %3 = vector.load %arg6[%c0, %c0_1] : memref<8x128xf32, #tpu.memory_space<vmem>>, vector<8x128xf32>
    %c0_2 = arith.constant 0 : index
    %c0_3 = arith.constant 0 : index
    %4 = vector.load %arg1[%c0_2, %c0_3] : memref<8x256xbf16, #tpu.memory_space<vmem>>, vector<8x256xbf16>
    %c0_4 = arith.constant 0 : index
    %c0_5 = arith.constant 0 : index
    %5 = vector.load %arg2[%c0_4, %c0_5] : memref<256x128xbf16, #tpu.memory_space<vmem>>, vector<256x128xbf16>
    %cst = arith.constant dense<0.000000e+00> : vector<8x128xf32>
    %6 = tpu.matmul %4, %5, %cst {dimension_numbers = #tpu.dot_dimension_numbers<[1], [0], [0], [1], [0, 0, 1, 1], [], []>} : vector<8x256xbf16>, vector<256x128xbf16>, vector<8x128xf32> -> vector<8x128xf32>
    %7 = arith.addf %3, %6 : vector<8x128xf32>
    %c0_6 = arith.constant 0 : index
    %c0_7 = arith.constant 0 : index
    %8 = vector.load %arg6[%c0_6, %c0_7] : memref<8x128xf32, #tpu.memory_space<vmem>>, vector<8x128xf32>
    tpu.vector_store %arg6[%c0_6, %c0_7], %7 {strides = array<i32>} : memref<8x128xf32, #tpu.memory_space<vmem>>, vector<8x128xf32>,
    %c0_i32_8 = arith.constant 0 : i32
    %9 = arith.cmpi eq, %arg0, %c0_i32_8 : i32
    %10 = arith.extui %9 : i1 to i32
    %c0_i32_9 = arith.constant 0 : i32
    %11 = arith.cmpi ne, %10, %c0_i32_9 : i32
    scf.if %11 {
      %c0_10 = arith.constant 0 : index
      %c0_11 = arith.constant 0 : index
      %12 = vector.load %arg6[%c0_10, %c0_11] : memref<8x128xf32, #tpu.memory_space<vmem>>, vector<8x128xf32>
      %13 = arith.truncf %12 : vector<8x128xf32> to vector<8x128xbf16>
      %c0_12 = arith.constant 0 : index
      %c0_13 = arith.constant 0 : index
      %14 = vector.load %arg3[%c0_12, %c0_13] : memref<128x128xbf16, #tpu.memory_space<vmem>>, vector<128x128xbf16>
      %cst_14 = arith.constant dense<0.000000e+00> : vector<8x128xf32>
      %15 = tpu.matmul %13, %14, %cst_14 {dimension_numbers = #tpu.dot_dimension_numbers<[1], [0], [0], [1], [0, 0, 1, 1], [], []>} : vector<8x128xbf16>, vector<128x128xbf16>, vector<8x128xf32> -> vector<8x128xf32>
      %c0_15 = arith.constant 0 : index
      %c0_16 = arith.constant 0 : index
      %16 = vector.load %arg4[%c0_15, %c0_16] : memref<1x128xf32, #tpu.memory_space<vmem>>, vector<1x128xf32>
      %17 = vector.broadcast %16 : vector<1x128xf32> to vector<8x128xf32>
      %18 = arith.addf %15, %17 : vector<8x128xf32>
      %c0_17 = arith.constant 0 : index
      %c0_18 = arith.constant 0 : index
      %19 = vector.load %arg5[%c0_17, %c0_18] : memref<8x128xf32, #tpu.memory_space<vmem>>, vector<8x128xf32>
      tpu.vector_store %arg5[%c0_17, %c0_18], %18 {strides = array<i32>} : memref<8x128xf32, #tpu.memory_space<vmem>>, vector<8x128xf32>,
    } else {
    }
    return
  }
  func.func @transform_0(%arg0: i32) -> (i32, i32) {
    %c0_i32 = arith.constant 0 : i32
    %c0_i32_0 = arith.constant 0 : i32
    return %c0_i32, %arg0 : i32, i32
  }
  func.func @transform_1(%arg0: i32) -> (i32, i32) {
    %c0_i32 = arith.constant 0 : i32
    %c0_i32_0 = arith.constant 0 : i32
    return %arg0, %c0_i32 : i32, i32
  }
  func.func @transform_2(%arg0: i32) -> (i32, i32) {
    %c0_i32 = arith.constant 0 : i32
    %c0_i32_0 = arith.constant 0 : i32
    %c0_i32_1 = arith.constant 0 : i32
    return %c0_i32, %c0_i32_0 : i32, i32
  }
  func.func @transform_3(%arg0: i32) -> (i32, i32) {
    %c0_i32 = arith.constant 0 : i32
    %c0_i32_0 = arith.constant 0 : i32
    %c0_i32_1 = arith.constant 0 : i32
    return %c0_i32, %c0_i32_0 : i32, i32
  }
  func.func @transform_4(%arg0: i32) -> (i32, i32) {
    %c0_i32 = arith.constant 0 : i32
    %c0_i32_0 = arith.constant 0 : i32
    %c0_i32_1 = arith.constant 0 : i32
    return %c0_i32, %c0_i32_0 : i32, i32
  }
}

</mosaic_0001>

<bundles_post_ra>
// kernel: basegraph_forward.3
= control target key start
LH: loop header
LB: loop body
LE: loop exit
PB: predicated region body
PF: predicated region fallthrough
CT: control target
= control target key end

     0   :  { %s1741_s1 = inlined_call_operand.vmem [shape: bf16[256,128], index: 1, kind: input, shape index: {}]   ;;  %s1742_s0 = inlined_call_operand.vmem [shape: bf16[256,256], index: 0, kind: input, shape index: {}]   ;;  %s1743_s2 = inlined_call_operand.vmem [shape: bf16[128,128], index: 2, kind: input, shape index: {}]   ;;  %s1744_s3 = inlined_call_operand.vmem [shape: f32[1,128], index: 3, kind: input, shape index: {}]   ;;  %s1745_s4 = inlined_call_operand.vmem [shape: bf16[256,128], index: 4, kind: output, shape index: {}]  }
   0x1   :  { %v1218_v0 = vld [vmem:[%s1741_s1 + $0x38] sm:$0xff]  ;;  %v1217_v2 = vld [vmem:[%s1741_s1 + $0x30] sm:$0xff]  ;;  %v1216_v4 = vld [vmem:[%s1741_s1 + $0x28] sm:$0xff] }
   0x2   :  { %v1226_v1 = vld [vmem:[%s1741_s1 + $0x78] sm:$0xff]  ;;  %405 = vmatpush.bf16.msra.mxu0 %v1218_v0  ;;  %1330 = vmatpush.bf16.msra.mxu3 %v1218_v0  ;;  %v1225_v3 = vld [vmem:[%s1741_s1 + $0x70] sm:$0xff]  ;;  %v1224_v5 = vld [vmem:[%s1741_s1 + $0x68] sm:$0xff] }
   0x3   :  { %494 = vmatpush.bf16.msra.mxu1 %v1226_v1  ;;  %v1215_v6 = vld [vmem:[%s1741_s1 + $0x20] sm:$0xff]  ;;  %v1214_v8 = vld [vmem:[%s1741_s1 + $0x18] sm:$0xff]  ;;  %v1213_v10 = vld [vmem:[%s1741_s1 + $0x10] sm:$0xff] }
   0x4   :  { %v1223_v7 = vld [vmem:[%s1741_s1 + $0x60] sm:$0xff]  ;;  %v1222_v9 = vld [vmem:[%s1741_s1 + $0x58] sm:$0xff]  ;;  %v1221_v11 = vld [vmem:[%s1741_s1 + $0x50] sm:$0xff] }
   0x5   :  { %v1212_v12 = vld [vmem:[%s1741_s1 + $0x8] sm:$0xff]  ;;  %v1211_v14 = vld [vmem:[%s1741_s1] sm:$0xff]  ;;  %v965_v25 = vld [vmem:[%s1742_s0 + $0x10] sm:$0xf] }
   0x6   :  { %406 = vmatpush.bf16.msra.mxu0 %v1217_v2  ;;  %1331 = vmatpush.bf16.msra.mxu3 %v1217_v2  ;;  %v1220_v13 = vld [vmem:[%s1741_s1 + $0x48] sm:$0xff]  ;;  %v957_v15 = vld [vmem:[%s1742_s0] sm:$0xf]  ;;  %v1179_v20 = vld [vmem:[%s1742_s0 + $0x4] sm:$0xf] }
   0x7   :  { %495 = vmatpush.bf16.msra.mxu1 %v1225_v3  ;;  %v1180_v16 = vld [vmem:[%s1742_s0 + $0x4] sm:$0xf0]  ;;  %v1053_v17 = vld [vmem:[%s1742_s0 + $0xc0] sm:$0xf]  ;;  %v959_v21 = vld [vmem:[%s1742_s0 + $0x8] sm:$0xf0] }
   0x8   :  { %v1204_v18 = vld [vmem:[%s1742_s0 + $0xc4] sm:$0xf0]  ;;  %v1219_v19 = vld [vmem:[%s1741_s1 + $0x40] sm:$0xff]  ;;  %v958_v22 = vor.u32 %v1180_v16, %v957_v15  ;;  %v962_v24 = vor.u32 %v1179_v20, %v959_v21  ;;  %v1182_v26 = vld [vmem:[%s1742_s0 + $0x14] sm:$0xf0] }
   0x9   :  { %v1054_v23 = vor.u32 %v1204_v18, %v1053_v17  ;;  %v1061_v27 = vld [vmem:[%s1742_s0 + $0xd0] sm:$0xf]  ;;  %v1206_v28 = vld [vmem:[%s1742_s0 + $0xd4] sm:$0xf0]  ;;  %v1181_v29 = vld [vmem:[%s1742_s0 + $0x14] sm:$0xf]  ;;  %v966_v31 = vor.u32 %v1182_v26, %v965_v25 }
   0xa   :  { %407 = vmatpush.bf16.msra.mxu0 %v1216_v4  ;;  %1332 = vmatpush.bf16.msra.mxu3 %v1216_v4  ;;  %v967_v30 = vld [vmem:[%s1742_s0 + $0x18] sm:$0xf0]  ;;  %v1062_v32 = vor.u32 %v1206_v28, %v1061_v27  ;;  %v973_v34 = vld [vmem:[%s1742_s0 + $0x20] sm:$0xf]  ;;  %v1184_v35 = vld [vmem:[%s1742_s0 + $0x24] sm:$0xf0] }
   0xb   :  { %496 = vmatpush.bf16.msra.mxu1 %v1224_v5  ;;  %v970_v33 = vor.u32 %v1181_v29, %v967_v30  ;;  %v1069_v36 = vld [vmem:[%s1742_s0 + $0xe0] sm:$0xf]  ;;  %v1208_v37 = vld [vmem:[%s1742_s0 + $0xe4] sm:$0xf0]  ;;  %v1183_v38 = vld [vmem:[%s1742_s0 + $0x24] sm:$0xf]  ;;  %v974_v40 = vor.u32 %v1184_v35, %v973_v34 }
   0xc   :  { %v975_v39 = vld [vmem:[%s1742_s0 + $0x28] sm:$0xf0]  ;;  %v1070_v41 = vor.u32 %v1208_v37, %v1069_v36  ;;  %v981_v43 = vld [vmem:[%s1742_s0 + $0x30] sm:$0xf]  ;;  %v1186_v44 = vld [vmem:[%s1742_s0 + $0x34] sm:$0xf0] }
   0xd   :  { %v978_v42 = vor.u32 %v1183_v38, %v975_v39  ;;  %v1077_v45 = vld [vmem:[%s1742_s0 + $0xf0] sm:$0xf]  ;;  %v1210_v46 = vld [vmem:[%s1742_s0 + $0xf4] sm:$0xf0]  ;;  %v1185_v47 = vld [vmem:[%s1742_s0 + $0x34] sm:$0xf]  ;;  %v982_v49 = vor.u32 %v1186_v44, %v981_v43 }
   0xe   :  { %408 = vmatpush.bf16.msra.mxu0 %v1215_v6  ;;  %1333 = vmatpush.bf16.msra.mxu3 %v1215_v6  ;;  %v983_v48 = vld [vmem:[%s1742_s0 + $0x38] sm:$0xf0]  ;;  %v1078_v50 = vor.u32 %v1210_v46, %v1077_v45  ;;  %v989_v52 = vld [vmem:[%s1742_s0 + $0x40] sm:$0xf]  ;;  %v1188_v53 = vld [vmem:[%s1742_s0 + $0x44] sm:$0xf0] }
   0xf   :  { %497 = vmatpush.bf16.msra.mxu1 %v1223_v7  ;;  %v986_v51 = vor.u32 %v1185_v47, %v983_v48  ;;  %v1203_v54 = vld [vmem:[%s1742_s0 + $0xc4] sm:$0xf]  ;;  %v1055_v55 = vld [vmem:[%s1742_s0 + $0xc8] sm:$0xf0]  ;;  %v990_v58 = vor.u32 %v1188_v53, %v989_v52  ;;  %v1234_v61 = vld [vmem:[%s1743_s2 + $0x38] sm:$0xff] }
  0x10   :  { %v1187_v56 = vld [vmem:[%s1742_s0 + $0x44] sm:$0xf]  ;;  %v991_v57 = vld [vmem:[%s1742_s0 + $0x48] sm:$0xf0]  ;;  %v1058_v59 = vor.u32 %v1203_v54, %v1055_v55  ;;  %766 = vmatpush.bf16.msra.mxu2 %v1234_v61  ;;  %v1233_v62 = vld [vmem:[%s1743_s2 + $0x30] sm:$0xff] }
  0x11   :  { %v994_v60 = vor.u32 %v1187_v56, %v991_v57  ;;  %v997_v63 = vld [vmem:[%s1742_s0 + $0x50] sm:$0xf]  ;;  %v1190_v0 = vld [vmem:[%s1742_s0 + $0x54] sm:$0xf0]  ;;  %v1063_v2 = vld [vmem:[%s1742_s0 + $0xd8] sm:$0xf0] }
  0x12   :  { %409 = vmatpush.bf16.msra.mxu0 %v1214_v8  ;;  %1334 = vmatpush.bf16.msra.mxu3 %v1214_v8  ;;  %v999_v4 = vld [vmem:[%s1742_s0 + $0x58] sm:$0xf0]  ;;  %v1232_v8 = vld [vmem:[%s1743_s2 + $0x28] sm:$0xff]  ;;  %v1191_v15 = vld [vmem:[%s1742_s0 + $0x64] sm:$0xf] }
  0x13   :  { %498 = vmatpush.bf16.msra.mxu1 %v1222_v9  ;;  %v1007_v16 = vld [vmem:[%s1742_s0 + $0x68] sm:$0xf0]  ;;  %v1229_v20 = vld [vmem:[%s1743_s2 + $0x10] sm:$0xff]  ;;  %v1079_v26 = vld [vmem:[%s1742_s0 + $0xf8] sm:$0xf0] }
  0x14   :  { %767 = vmatpush.bf16.msra.mxu2 %v1233_v62  ;;  %v1228_v21 = vld [vmem:[%s1743_s2 + $0x8] sm:$0xff]  ;;  %v1209_v25 = vld [vmem:[%s1742_s0 + $0xf4] sm:$0xf]  ;;  %v1015_v28 = vld [vmem:[%s1742_s0 + $0x78] sm:$0xf0] }
  0x15   :  { %v1193_v27 = vld [vmem:[%s1742_s0 + $0x74] sm:$0xf]  ;;  %v1082_v30 = vor.u32 %v1209_v25, %v1079_v26  ;;  %v1195_v34 = vld [vmem:[%s1742_s0 + $0x84] sm:$0xf]  ;;  %v1023_v35 = vld [vmem:[%s1742_s0 + $0x88] sm:$0xf0] }
  0x16   :  { %410 = vmatpush.bf16.msra.mxu0 %v1213_v10  ;;  %1335 = vmatpush.bf16.msra.mxu3 %v1213_v10  ;;  %v1230_v10 = vld [vmem:[%s1743_s2 + $0x18] sm:$0xff]  ;;  %v1026_v38 = vor.u32 %v1195_v34, %v1023_v35  ;;  %v1029_v46 = vld [vmem:[%s1742_s0 + $0x90] sm:$0xf]  ;;  %v1197_v48 = vld [vmem:[%s1742_s0 + $0x94] sm:$0xf] }
  0x17   :  { %499 = vmatpush.bf16.msra.mxu1 %v1221_v11  ;;  %v1198_v47 = vld [vmem:[%s1742_s0 + $0x94] sm:$0xf0] }
  0x18   :  { %768 = vmatpush.bf16.msra.mxu2 %v1232_v8 }
  0x1a   :  { %411 = vmatpush.bf16.msra.mxu0 %v1212_v12  ;;  %1336 = vmatpush.bf16.msra.mxu3 %v1212_v12  ;;  %v1192_v12 = vld [vmem:[%s1742_s0 + $0x64] sm:$0xf0] }
  0x1b   :  { %500 = vmatpush.bf16.msra.mxu1 %v1220_v13 }
  0x1e   :  { %412 = vmatpush.bf16.msra.mxu0 %v1211_v14  ;;  %1337 = vmatpush.bf16.msra.mxu3 %v1211_v14  ;;  %v1071_v14 = vld [vmem:[%s1742_s0 + $0xe8] sm:$0xf0] }
  0x1f   :  { %501 = vmatpush.bf16.msra.mxu1 %v1219_v19 }
  0x21   :  { %413 = vmatmul.bf16.vlgmr.msra.gmra.mxu0 %v958_v22  ;;  %473 = vmatmul.bf16.vlgmr.msra.gmra.mxu3 %v1054_v23  ;;  %v1227_v22 = vld [vmem:[%s1743_s2] sm:$0xff]  ;;  %v1013_v23 = vld [vmem:[%s1742_s0 + $0x70] sm:$0xf] }
  0x22   :  { %1338 = vmatpush.bf16.msrb.mxu3 %v1226_v1  ;;  %502 = vmatmul.bf16.vlgmr.msra.gmra.mxu1 %v962_v24  ;;  %v1205_v1 = vld [vmem:[%s1742_s0 + $0xd4] sm:$0xf]  ;;  %v1194_v24 = vld [vmem:[%s1742_s0 + $0x74] sm:$0xf0] }
  0x23   :  { %v1066_v6 = vor.u32 %v1205_v1, %v1063_v2  ;;  %v1014_v29 = vor.u32 %v1194_v24, %v1013_v23 }
  0x26   :  { %1339 = vmatpush.bf16.msrb.mxu3 %v1225_v3  ;;  %v1189_v3 = vld [vmem:[%s1742_s0 + $0x54] sm:$0xf] }
  0x2a   :  { %1340 = vmatpush.bf16.msrb.mxu3 %v1224_v5  ;;  %v998_v5 = vor.u32 %v1190_v0, %v997_v63  ;;  %v1199_v63 = vld [vmem:[%s1742_s0 + $0xa4] sm:$0xf]  ;;  %v1039_v0 = vld [vmem:[%s1742_s0 + $0xa8] sm:$0xf0] }
  0x2e   :  { %1341 = vmatpush.bf16.msrb.mxu3 %v1223_v7  ;;  %v1002_v7 = vor.u32 %v1189_v3, %v999_v4  ;;  %v1042_v4 = vor.u32 %v1199_v63, %v1039_v0 }
  0x31   :  { %418 = vmatmul.bf16.gmra.mxu0 %v966_v31  ;;  %478 = vmatmul.bf16.gmra.mxu3 %v1062_v32  ;;  %v1018_v31 = vor.u32 %v1193_v27, %v1015_v28  ;;  %v1021_v32 = vld [vmem:[%s1742_s0 + $0x80] sm:$0xf] }
  0x32   :  { %1342 = vmatpush.bf16.msrb.mxu3 %v1222_v9  ;;  %507 = vmatmul.bf16.gmra.mxu1 %v970_v33  ;;  %v1231_v9 = vld [vmem:[%s1743_s2 + $0x20] sm:$0xff]  ;;  %v1196_v33 = vld [vmem:[%s1742_s0 + $0x84] sm:$0xf0] }
  0x33   :  { %769 = vmatpush.bf16.msra.mxu2 %v1231_v9  ;;  %v1022_v36 = vor.u32 %v1196_v33, %v1021_v32 }
  0x36   :  { %1343 = vmatpush.bf16.msrb.mxu3 %v1221_v11  ;;  %v1005_v11 = vld [vmem:[%s1742_s0 + $0x60] sm:$0xf] }
  0x37   :  { %770 = vmatpush.bf16.msra.mxu2 %v1230_v10  ;;  %v1006_v17 = vor.u32 %v1192_v12, %v1005_v11  ;;  %v1045_v12 = vld [vmem:[%s1742_s0 + $0xb0] sm:$0xf] }
  0x3a   :  { %1344 = vmatpush.bf16.msrb.mxu3 %v1220_v13  ;;  %v1207_v13 = vld [vmem:[%s1742_s0 + $0xe4] sm:$0xf] }
  0x3b   :  { %v1074_v18 = vor.u32 %v1207_v13, %v1071_v14  ;;  %771 = vmatpush.bf16.msra.mxu2 %v1229_v20  ;;  %v1202_v13 = vld [vmem:[%s1742_s0 + $0xb4] sm:$0xf0]  ;;  %v1201_v14 = vld [vmem:[%s1742_s0 + $0xb4] sm:$0xf] }
  0x3e   :  { %1345 = vmatpush.bf16.msrb.mxu3 %v1219_v19  ;;  %v1010_v19 = vor.u32 %v1191_v15, %v1007_v16  ;;  %v1047_v15 = vld [vmem:[%s1742_s0 + $0xb8] sm:$0xf0] }
  0x3f   :  { %772 = vmatpush.bf16.msra.mxu2 %v1228_v21 }
  0x41   :  { %423 = vmatmul.bf16.gmra.mxu0 %v974_v40  ;;  %483 = vmatmul.bf16.gmra.mxu3 %v1070_v41 }
  0x42   :  { %512 = vmatmul.bf16.gmra.mxu1 %v978_v42  ;;  %1346 = vmatpush.bf16.msra.mxu3 %v1234_v61  ;;  %v1037_v61 = vld [vmem:[%s1742_s0 + $0xa0] sm:$0xf] }
  0x43   :  { %773 = vmatpush.bf16.msra.mxu2 %v1227_v22 }
  0x46   :  { %1347 = vmatpush.bf16.msra.mxu3 %v1233_v62  ;;  %v1200_v62 = vld [vmem:[%s1742_s0 + $0xa4] sm:$0xf0] }
  0x47   :  { %v1038_v2 = vor.u32 %v1200_v62, %v1037_v61 }
  0x4a   :  { %1348 = vmatpush.bf16.msra.mxu3 %v1232_v8 }
  0x4e   :  { %1349 = vmatpush.bf16.msra.mxu3 %v1231_v9 }
  0x51   :  { %428 = vmatmul.bf16.gmra.mxu0 %v982_v49  ;;  %488 = vmatmul.bf16.gmra.mxu3 %v1078_v50  ;;  %v1031_v49 = vld [vmem:[%s1742_s0 + $0x98] sm:$0xf0] }
  0x52   :  { %517 = vmatmul.bf16.gmra.mxu1 %v986_v51  ;;  %1350 = vmatpush.bf16.msra.mxu3 %v1230_v10  ;;  %v1030_v51 = vor.u32 %v1198_v47, %v1029_v46  ;;  %v1034_v53 = vor.u32 %v1197_v48, %v1031_v49 }
  0x56   :  { %1351 = vmatpush.bf16.msra.mxu3 %v1229_v20 }
  0x5a   :  { %1352 = vmatpush.bf16.msra.mxu3 %v1228_v21 }
  0x5e   :  { %1353 = vmatpush.bf16.msra.mxu3 %v1227_v22 }
  0x61   :  { %433 = vmatmul.bf16.gmra.mxu0 %v990_v58  ;;  %562 = vmatmul.bf16.vlgmr.msrb.gmra.mxu3 %v1058_v59 }
  0x62   :  { %522 = vmatmul.bf16.gmra.mxu1 %v994_v60 }
  0x71   :  { %438 = vmatmul.bf16.gmra.mxu0 %v998_v5  ;;  %567 = vmatmul.bf16.gmra.mxu3 %v1066_v6 }
  0x72   :  { %527 = vmatmul.bf16.gmra.mxu1 %v1002_v7 }
  0x81   :  { %443 = vmatmul.bf16.gmra.mxu0 %v1006_v17  ;;  %572 = vmatmul.bf16.gmra.mxu3 %v1074_v18  ;;  %v1046_v17 = vor.u32 %v1202_v13, %v1045_v12 }
  0x82   :  { %532 = vmatmul.bf16.gmra.mxu1 %v1010_v19  ;;  %v1050_v19 = vor.u32 %v1201_v14, %v1047_v15 }
  0x91   :  { %448 = vmatmul.bf16.gmra.mxu0 %v1014_v29  ;;  %577 = vmatmul.bf16.gmra.mxu3 %v1082_v30 }
  0x92   :  { %537 = vmatmul.bf16.gmra.mxu1 %v1018_v31 }
  0x9e   :  { %v414_v37 = vpop.f32.mrf.mxu0 }
  0x9f   :  { %v503_v39 = vpop.f32.mrf.mxu1 }
  0xa0   :  { %v504_v43 = vadd.f32 %v503_v39, %v414_v37 }
  0xa1   :  { %453 = vmatmul.bf16.gmra.mxu0 %v1022_v36 }
  0xa2   :  { %542 = vmatmul.bf16.gmra.mxu1 %v1026_v38 }
  0xa4   :  { %v1608_v40 = vpop.f32.mrf.mxu3 }
  0xa6   :  { %v416_v41 = vpop.f32.mrf.mxu0 }
  0xa7   :  { %v505_v42 = vpop.f32.mrf.mxu1 }
  0xa8   :  { %v506_v44 = vadd.f32 %v505_v42, %v416_v41 }
  0xaa   :  { %v682_v45 = vpack.c.bf16 %v506_v44, %v504_v43 }
  0xac   :  { %774 = vmatmul.bf16.vlgmr.msra.gmra.mxu2 %v682_v45  ;;  %v1622_v50 = vpop.f32.mrf.mxu3 }
  0xae   :  { %v419_v52 = vpop.f32.mrf.mxu0 }
  0xaf   :  { %v508_v54 = vpop.f32.mrf.mxu1 }
  0xb0   :  { %v509_v58 = vadd.f32 %v508_v54, %v419_v52 }
  0xb1   :  { %458 = vmatmul.bf16.gmra.mxu0 %v1030_v51 }
  0xb2   :  { %547 = vmatmul.bf16.gmra.mxu1 %v1034_v53 }
  0xb4   :  { %v1624_v55 = vpop.f32.mrf.mxu3 }
  0xb6   :  { %v421_v56 = vpop.f32.mrf.mxu0 }
  0xb7   :  { %v510_v57 = vpop.f32.mrf.mxu1 }
  0xb8   :  { %v511_v59 = vadd.f32 %v510_v57, %v421_v56 }
  0xba   :  { %v683_v60 = vpack.c.bf16 %v511_v59, %v509_v58 }
  0xbc   :  { %779 = vmatmul.bf16.gmra.mxu2 %v683_v60  ;;  %v481_v1 = vpop.f32.mrf.mxu3 }
  0xbe   :  { %v424_v3 = vpop.f32.mrf.mxu0 }
  0xbf   :  { %v513_v5 = vpop.f32.mrf.mxu1 }
  0xc0   :  { %v514_v9 = vadd.f32 %v513_v5, %v424_v3 }
  0xc1   :  { %463 = vmatmul.bf16.gmra.mxu0 %v1038_v2 }
  0xc2   :  { %552 = vmatmul.bf16.gmra.mxu1 %v1042_v4 }
  0xc4   :  { %v1638_v6 = vpop.f32.mrf.mxu3 }
  0xc6   :  { %v426_v7 = vpop.f32.mrf.mxu0 }
  0xc7   :  { %v515_v8 = vpop.f32.mrf.mxu1 }
  0xc8   :  { %v516_v10 = vadd.f32 %v515_v8, %v426_v7 }
  0xca   :  { %v684_v11 = vpack.c.bf16 %v516_v10, %v514_v9 }
  0xcc   :  { %784 = vmatmul.bf16.gmra.mxu2 %v684_v11  ;;  %v486_v16 = vpop.f32.mrf.mxu3 }
  0xce   :  { %v429_v18 = vpop.f32.mrf.mxu0 }
  0xcf   :  { %v518_v20 = vpop.f32.mrf.mxu1 }
  0xd0   :  { %v519_v24 = vadd.f32 %v518_v20, %v429_v18 }
  0xd1   :  { %468 = vmatmul.bf16.gmra.mxu0 %v1046_v17 }
  0xd2   :  { %557 = vmatmul.bf16.gmra.mxu1 %v1050_v19 }
  0xd4   :  { %v489_v21 = vpop.f32.mrf.mxu3 }
  0xd6   :  { %v431_v22 = vpop.f32.mrf.mxu0 }
  0xd7   :  { %v520_v23 = vpop.f32.mrf.mxu1 }
  0xd8   :  { %v521_v25 = vadd.f32 %v520_v23, %v431_v22  ;;  %v1659_v23 = vld [vmem:[%s1744_s3] ss:$0 sm:$0xff] }
  0xda   :  { %v685_v26 = vpack.c.bf16 %v521_v25, %v519_v24 }
  0xdc   :  { %789 = vmatmul.bf16.gmra.mxu2 %v685_v26  ;;  %v491_v27 = vpop.f32.mrf.mxu3 }
  0xde   :  { %v434_v28 = vpop.f32.mrf.mxu0 }
  0xdf   :  { %v523_v29 = vpop.f32.mrf.mxu1 }
  0xe0   :  { %v524_v33 = vadd.f32 %v523_v29, %v434_v28 }
  0xe4   :  { %v563_v30 = vpop.f32.mrf.mxu3 }
  0xe5   :  { %v564_v37 = vadd.f32 %v563_v30, %v1608_v40 }
  0xe6   :  { %v436_v31 = vpop.f32.mrf.mxu0 }
  0xe7   :  { %v525_v32 = vpop.f32.mrf.mxu1 }
  0xe8   :  { %v526_v34 = vadd.f32 %v525_v32, %v436_v31 }
  0xea   :  { %v686_v35 = vpack.c.bf16 %v526_v34, %v524_v33 }
  0xec   :  { %794 = vmatmul.bf16.gmra.mxu2 %v686_v35  ;;  %v565_v36 = vpop.f32.mrf.mxu3 }
  0xed   :  { %v566_v38 = vadd.f32 %v565_v36, %v1622_v50 }
  0xee   :  { %v439_v39 = vpop.f32.mrf.mxu0 }
  0xef   :  { %v694_v41 = vpack.c.bf16 %v566_v38, %v564_v37  ;;  %v528_v42 = vpop.f32.mrf.mxu1 }
  0xf0   :  { %v529_v46 = vadd.f32 %v528_v42, %v439_v39 }
  0xf1   :  { %834 = vmatmul.bf16.vlgmr.msra.gmra.mxu3 %v694_v41 }
  0xf4   :  { %v568_v43 = vpop.f32.mrf.mxu3 }
  0xf5   :  { %v569_v51 = vadd.f32 %v568_v43, %v1624_v55 }
  0xf6   :  { %v441_v44 = vpop.f32.mrf.mxu0 }
  0xf7   :  { %v530_v45 = vpop.f32.mrf.mxu1 }
  0xf8   :  { %v531_v47 = vadd.f32 %v530_v45, %v441_v44 }
  0xfa   :  { %v687_v48 = vpack.c.bf16 %v531_v47, %v529_v46 }
  0xfc   :  { %799 = vmatmul.bf16.gmra.mxu2 %v687_v48  ;;  %v570_v49 = vpop.f32.mrf.mxu3 }
  0xfd   :  { %v571_v52 = vadd.f32 %v570_v49, %v481_v1 }
  0xfe   :  { %v444_v53 = vpop.f32.mrf.mxu0 }
  0xff   :  { %v533_v54 = vpop.f32.mrf.mxu1  ;;  %v695_v40 = vpack.c.bf16 %v571_v52, %v569_v51 }
 0x100   :  { %v534_v58 = vadd.f32 %v533_v54, %v444_v53 }
 0x101   :  { %839 = vmatmul.bf16.gmra.mxu3 %v695_v40 }
 0x104   :  { %v573_v50 = vpop.f32.mrf.mxu3 }
 0x105   :  { %v574_v62 = vadd.f32 %v573_v50, %v1638_v6 }
 0x106   :  { %v446_v56 = vpop.f32.mrf.mxu0 }
 0x107   :  { %v535_v57 = vpop.f32.mrf.mxu1 }
 0x108   :  { %v536_v59 = vadd.f32 %v535_v57, %v446_v56 }
 0x10a   :  { %v688_v60 = vpack.c.bf16 %v536_v59, %v534_v58 }
 0x10c   :  { %804 = vmatmul.bf16.gmra.mxu2 %v688_v60  ;;  %v575_v61 = vpop.f32.mrf.mxu3 }
 0x10d   :  { %v576_v63 = vadd.f32 %v575_v61, %v486_v16 }
 0x10e   :  { %v449_v0 = vpop.f32.mrf.mxu0 }
 0x10f   :  { %v538_v2 = vpop.f32.mrf.mxu1  ;;  %v696_v3 = vpack.c.bf16 %v576_v63, %v574_v62 }
 0x110   :  { %v539_v5 = vadd.f32 %v538_v2, %v449_v0 }
 0x111   :  { %844 = vmatmul.bf16.gmra.mxu3 %v696_v3 }
 0x114   :  { %v578_v55 = vpop.f32.mrf.mxu3 }
 0x115   :  { %v579_v10 = vadd.f32 %v578_v55, %v489_v21 }
 0x116   :  { %v451_v1 = vpop.f32.mrf.mxu0 }
 0x117   :  { %v540_v4 = vpop.f32.mrf.mxu1 }
 0x118   :  { %v541_v7 = vadd.f32 %v540_v4, %v451_v1 }
 0x11a   :  { %v689_v8 = vpack.c.bf16 %v541_v7, %v539_v5 }
 0x11c   :  { %809 = vmatmul.bf16.gmra.mxu2 %v689_v8  ;;  %v580_v9 = vpop.f32.mrf.mxu3 }
 0x11d   :  { %v581_v11 = vadd.f32 %v580_v9, %v491_v27 }
 0x11e   :  { %v454_v12 = vpop.f32.mrf.mxu0 }
 0x11f   :  { %v543_v13 = vpop.f32.mrf.mxu1  ;;  %v697_v14 = vpack.c.bf16 %v581_v11, %v579_v10 }
 0x120   :  { %v544_v16 = vadd.f32 %v543_v13, %v454_v12 }
 0x121   :  { %849 = vmatmul.bf16.gmra.mxu3 %v697_v14 }
 0x126   :  { %v456_v6 = vpop.f32.mrf.mxu0 }
 0x127   :  { %v545_v15 = vpop.f32.mrf.mxu1 }
 0x128   :  { %v546_v17 = vadd.f32 %v545_v15, %v456_v6 }
 0x12a   :  { %v690_v18 = vpack.c.bf16 %v546_v17, %v544_v16 }
 0x12c   :  { %814 = vmatmul.bf16.gmra.mxu2 %v690_v18 }
 0x12e   :  { %v459_v19 = vpop.f32.mrf.mxu0 }
 0x12f   :  { %v548_v20 = vpop.f32.mrf.mxu1  ;;  %v775_v22 = vpop.f32.mrf.mxu2 }
 0x130   :  { %v776_v21 = vadd.f32 %v1659_v23, %v775_v22  ;;  %v549_v27 = vadd.f32 %v548_v20, %v459_v19 }
 0x132   :  { %v855_v30 = vmax.f32 %v776_v21, 0.0 }
 0x136   :  { %v461_v24 = vpop.f32.mrf.mxu0 }
 0x137   :  { %v550_v25 = vpop.f32.mrf.mxu1  ;;  %v777_v26 = vpop.f32.mrf.mxu2 }
 0x138   :  { %v551_v28 = vadd.f32 %v550_v25, %v461_v24  ;;  %v778_v29 = vadd.f32 %v1659_v23, %v777_v26 }
 0x13a   :  { %v856_v31 = vmax.f32 %v778_v29, 0.0  ;;  %v691_v32 = vpack.c.bf16 %v551_v28, %v549_v27 }
 0x13c   :  { %v1238_v33 = vpack.c.bf16 %v856_v31, %v855_v30  ;;  %819 = vmatmul.bf16.gmra.mxu2 %v691_v32 }
 0x13e   :  { %1239 = vst [vmem:[%s1745_s4] sm:$0xff] %v1238_v33   ;;  %v464_v34 = vpop.f32.mrf.mxu0 }
 0x13f   :  { %v553_v35 = vpop.f32.mrf.mxu1  ;;  %v780_v36 = vpop.f32.mrf.mxu2 }
 0x140   :  { %v781_v37 = vadd.f32 %v1659_v23, %v780_v36  ;;  %v554_v42 = vadd.f32 %v553_v35, %v464_v34 }
 0x142   :  { %v857_v45 = vmax.f32 %v781_v37, 0.0 }
 0x146   :  { %v466_v38 = vpop.f32.mrf.mxu0 }
 0x147   :  { %v555_v39 = vpop.f32.mrf.mxu1  ;;  %v782_v41 = vpop.f32.mrf.mxu2 }
 0x148   :  { %v556_v43 = vadd.f32 %v555_v39, %v466_v38  ;;  %v783_v44 = vadd.f32 %v1659_v23, %v782_v41 }
 0x14a   :  { %v858_v46 = vmax.f32 %v783_v44, 0.0  ;;  %v692_v47 = vpack.c.bf16 %v556_v43, %v554_v42 }
 0x14c   :  { %v1243_v48 = vpack.c.bf16 %v858_v46, %v857_v45  ;;  %824 = vmatmul.bf16.gmra.mxu2 %v692_v47 }
 0x14e   :  { %1315 = vst [vmem:[%s1745_s4 + $0x8] sm:$0xff] %v1243_v48   ;;  %v469_v49 = vpop.f32.mrf.mxu0 }
 0x14f   :  { %v558_v51 = vpop.f32.mrf.mxu1  ;;  %v785_v52 = vpop.f32.mrf.mxu2 }
 0x150   :  { %v786_v53 = vadd.f32 %v1659_v23, %v785_v52  ;;  %v559_v56 = vadd.f32 %v558_v51, %v469_v49 }
 0x152   :  { %v859_v59 = vmax.f32 %v786_v53, 0.0 }
 0x156   :  { %v471_v54 = vpop.f32.mrf.mxu0 }
 0x157   :  { %v560_v40 = vpop.f32.mrf.mxu1  ;;  %v787_v50 = vpop.f32.mrf.mxu2 }
 0x158   :  { %v561_v57 = vadd.f32 %v560_v40, %v471_v54  ;;  %v788_v58 = vadd.f32 %v1659_v23, %v787_v50 }
 0x15a   :  { %v860_v60 = vmax.f32 %v788_v58, 0.0  ;;  %v693_v61 = vpack.c.bf16 %v561_v57, %v559_v56 }
 0x15c   :  { %v1248_v62 = vpack.c.bf16 %v860_v60, %v859_v59  ;;  %829 = vmatmul.bf16.gmra.mxu2 %v693_v61 }
 0x15e   :  { %1316 = vst [vmem:[%s1745_s4 + $0x10] sm:$0xff] %v1248_v62  }
 0x15f   :  { %v790_v63 = vpop.f32.mrf.mxu2 }
 0x160   :  { %v791_v0 = vadd.f32 %v1659_v23, %v790_v63 }
 0x162   :  { %v861_v55 = vmax.f32 %v791_v0, 0.0 }
 0x167   :  { %v792_v2 = vpop.f32.mrf.mxu2 }
 0x168   :  { %v793_v3 = vadd.f32 %v1659_v23, %v792_v2 }
 0x16a   :  { %v862_v1 = vmax.f32 %v793_v3, 0.0 }
 0x16c   :  { %v1253_v4 = vpack.c.bf16 %v862_v1, %v861_v55 }
 0x16e   :  { %1317 = vst [vmem:[%s1745_s4 + $0x18] sm:$0xff] %v1253_v4  }
 0x16f   :  { %v795_v5 = vpop.f32.mrf.mxu2 }
 0x170   :  { %v796_v8 = vadd.f32 %v1659_v23, %v795_v5 }
 0x172   :  { %v863_v11 = vmax.f32 %v796_v8, 0.0 }
 0x174   :  { %v835_v7 = vpop.f32.mrf.mxu3 }
 0x175   :  { %v836_v13 = vadd.f32 %v1659_v23, %v835_v7 }
 0x177   :  { %v797_v9 = vpop.f32.mrf.mxu2  ;;  %v879_v16 = vmax.f32 %v836_v13, 0.0 }
 0x178   :  { %v798_v10 = vadd.f32 %v1659_v23, %v797_v9 }
 0x17a   :  { %v864_v12 = vmax.f32 %v798_v10, 0.0 }
 0x17c   :  { %v1258_v14 = vpack.c.bf16 %v864_v12, %v863_v11  ;;  %v837_v6 = vpop.f32.mrf.mxu3 }
 0x17d   :  { %v838_v15 = vadd.f32 %v1659_v23, %v837_v6 }
 0x17e   :  { %1318 = vst [vmem:[%s1745_s4 + $0x20] sm:$0xff] %v1258_v14  }
 0x17f   :  { %v880_v17 = vmax.f32 %v838_v15, 0.0  ;;  %v800_v18 = vpop.f32.mrf.mxu2 }
 0x180   :  { %v801_v22 = vadd.f32 %v1659_v23, %v800_v18 }
 0x181   :  { %v1298_v19 = vpack.c.bf16 %v880_v17, %v879_v16 }
 0x182   :  { %v865_v25 = vmax.f32 %v801_v22, 0.0 }
 0x183   :  { %1326 = vst [vmem:[%s1745_s4 + $0x60] sm:$0xff] %v1298_v19  }
 0x184   :  { %v840_v20 = vpop.f32.mrf.mxu3 }
 0x185   :  { %v841_v27 = vadd.f32 %v1659_v23, %v840_v20 }
 0x187   :  { %v802_v21 = vpop.f32.mrf.mxu2  ;;  %v881_v31 = vmax.f32 %v841_v27, 0.0 }
 0x188   :  { %v803_v24 = vadd.f32 %v1659_v23, %v802_v21 }
 0x18a   :  { %v866_v26 = vmax.f32 %v803_v24, 0.0 }
 0x18c   :  { %v1263_v28 = vpack.c.bf16 %v866_v26, %v865_v25  ;;  %v842_v29 = vpop.f32.mrf.mxu3 }
 0x18d   :  { %v843_v30 = vadd.f32 %v1659_v23, %v842_v29 }
 0x18e   :  { %1319 = vst [vmem:[%s1745_s4 + $0x28] sm:$0xff] %v1263_v28  }
 0x18f   :  { %v882_v32 = vmax.f32 %v843_v30, 0.0  ;;  %v805_v33 = vpop.f32.mrf.mxu2 }
 0x190   :  { %v806_v36 = vadd.f32 %v1659_v23, %v805_v33 }
 0x191   :  { %v1303_v34 = vpack.c.bf16 %v882_v32, %v881_v31 }
 0x192   :  { %v867_v39 = vmax.f32 %v806_v36, 0.0 }
 0x193   :  { %1327 = vst [vmem:[%s1745_s4 + $0x68] sm:$0xff] %v1303_v34  }
 0x194   :  { %v845_v35 = vpop.f32.mrf.mxu3 }
 0x195   :  { %v846_v42 = vadd.f32 %v1659_v23, %v845_v35 }
 0x197   :  { %v807_v37 = vpop.f32.mrf.mxu2  ;;  %v883_v46 = vmax.f32 %v846_v42, 0.0 }
 0x198   :  { %v808_v38 = vadd.f32 %v1659_v23, %v807_v37 }
 0x19a   :  { %v868_v41 = vmax.f32 %v808_v38, 0.0 }
 0x19c   :  { %v1268_v43 = vpack.c.bf16 %v868_v41, %v867_v39  ;;  %v847_v44 = vpop.f32.mrf.mxu3 }
 0x19d   :  { %v848_v45 = vadd.f32 %v1659_v23, %v847_v44 }
 0x19e   :  { %1320 = vst [vmem:[%s1745_s4 + $0x30] sm:$0xff] %v1268_v43  }
 0x19f   :  { %v884_v47 = vmax.f32 %v848_v45, 0.0  ;;  %v810_v48 = vpop.f32.mrf.mxu2 }
 0x1a0   :  { %v811_v52 = vadd.f32 %v1659_v23, %v810_v48 }
 0x1a1   :  { %v1308_v49 = vpack.c.bf16 %v884_v47, %v883_v46 }
 0x1a2   :  { %v869_v40 = vmax.f32 %v811_v52, 0.0 }
 0x1a3   :  { %1328 = vst [vmem:[%s1745_s4 + $0x70] sm:$0xff] %v1308_v49  }
 0x1a4   :  { %v850_v51 = vpop.f32.mrf.mxu3 }
 0x1a5   :  { %v851_v56 = vadd.f32 %v1659_v23, %v850_v51 }
 0x1a7   :  { %v812_v53 = vpop.f32.mrf.mxu2  ;;  %v885_v60 = vmax.f32 %v851_v56, 0.0 }
 0x1a8   :  { %v813_v54 = vadd.f32 %v1659_v23, %v812_v53 }
 0x1aa   :  { %v870_v50 = vmax.f32 %v813_v54, 0.0 }
 0x1ac   :  { %v1273_v57 = vpack.c.bf16 %v870_v50, %v869_v40  ;;  %v852_v58 = vpop.f32.mrf.mxu3 }
 0x1ad   :  { %v853_v59 = vadd.f32 %v1659_v23, %v852_v58 }
 0x1ae   :  { %1321 = vst [vmem:[%s1745_s4 + $0x38] sm:$0xff] %v1273_v57  }
 0x1af   :  { %v886_v61 = vmax.f32 %v853_v59, 0.0  ;;  %v815_v62 = vpop.f32.mrf.mxu2 }
 0x1b0   :  { %v816_v0 = vadd.f32 %v1659_v23, %v815_v62 }
 0x1b1   :  { %v1313_v63 = vpack.c.bf16 %v886_v61, %v885_v60 }
 0x1b2   :  { %v871_v55 = vmax.f32 %v816_v0, 0.0 }
 0x1b3   :  { %1329 = vst [vmem:[%s1745_s4 + $0x78] sm:$0xff] %v1313_v63  }
 0x1b7   :  { %v817_v2 = vpop.f32.mrf.mxu2 }
 0x1b8   :  { %v818_v3 = vadd.f32 %v1659_v23, %v817_v2 }
 0x1ba   :  { %v872_v1 = vmax.f32 %v818_v3, 0.0 }
 0x1bc   :  { %v1278_v4 = vpack.c.bf16 %v872_v1, %v871_v55 }
 0x1be   :  { %1322 = vst [vmem:[%s1745_s4 + $0x40] sm:$0xff] %v1278_v4  }
 0x1bf   :  { %v820_v5 = vpop.f32.mrf.mxu2 }
 0x1c0   :  { %v821_v7 = vadd.f32 %v1659_v23, %v820_v5 }
 0x1c2   :  { %v873_v10 = vmax.f32 %v821_v7, 0.0 }
 0x1c7   :  { %v822_v8 = vpop.f32.mrf.mxu2 }
 0x1c8   :  { %v823_v9 = vadd.f32 %v1659_v23, %v822_v8 }
 0x1ca   :  { %v874_v11 = vmax.f32 %v823_v9, 0.0 }
 0x1cc   :  { %v1283_v12 = vpack.c.bf16 %v874_v11, %v873_v10 }
 0x1ce   :  { %1323 = vst [vmem:[%s1745_s4 + $0x48] sm:$0xff] %v1283_v12  }
 0x1cf   :  { %v825_v13 = vpop.f32.mrf.mxu2 }
 0x1d0   :  { %v826_v14 = vadd.f32 %v1659_v23, %v825_v13 }
 0x1d2   :  { %v875_v16 = vmax.f32 %v826_v14, 0.0 }
 0x1d7   :  { %v827_v6 = vpop.f32.mrf.mxu2 }
 0x1d8   :  { %v828_v15 = vadd.f32 %v1659_v23, %v827_v6 }
 0x1da   :  { %v876_v17 = vmax.f32 %v828_v15, 0.0 }
 0x1dc   :  { %v1288_v18 = vpack.c.bf16 %v876_v17, %v875_v16 }
 0x1de   :  { %1324 = vst [vmem:[%s1745_s4 + $0x50] sm:$0xff] %v1288_v18  }
 0x1df   :  { %v830_v19 = vpop.f32.mrf.mxu2 }
 0x1e0   :  { %v831_v20 = vadd.f32 %v1659_v23, %v830_v19 }
 0x1e2   :  { %v877_v24 = vmax.f32 %v831_v20, 0.0 }
 0x1e7   :  { %v832_v22 = vpop.f32.mrf.mxu2 }
 0x1e8   :  { %v833_v21 = vadd.f32 %v1659_v23, %v832_v22 }
 0x1ea   :  { %v878_v25 = vmax.f32 %v833_v21, 0.0 }
 0x1ec   :  { %v1293_v26 = vpack.c.bf16 %v878_v25, %v877_v24 }
 0x1ee   :  { %1325 = vst [vmem:[%s1745_s4 + $0x58] sm:$0xff] %v1293_v26  }

// kernel: basegraph_forward.5
= control target key start
LH: loop header
LB: loop body
LE: loop exit
PB: predicated region body
PF: predicated region fallthrough
CT: control target
= control target key end

     0   :  { %s505_s1 = inlined_call_operand.vmem [shape: bf16[256,128], index: 1, kind: input, shape index: {}]   ;;  %s506_s2 = inlined_call_operand.vmem [shape: bf16[128,128], index: 2, kind: input, shape index: {}]   ;;  %s507_s0 = inlined_call_operand.vmem [shape: bf16[8,256], index: 0, kind: input, shape index: {}]   ;;  %s508_s3 = inlined_call_operand.vmem [shape: f32[1,128], index: 3, kind: input, shape index: {}]   ;;  %s509_s4 = inlined_call_operand.vmem [shape: f32[8,128], index: 4, kind: output, shape index: {}]  }
   0x1   :  { %v381_v0 = vld [vmem:[%s505_s1 + $0x38] sm:$0xff]  ;;  %v380_v2 = vld [vmem:[%s505_s1 + $0x30] sm:$0xff]  ;;  %v379_v5 = vld [vmem:[%s505_s1 + $0x28] sm:$0xff] }
   0x2   :  { %v389_v1 = vld [vmem:[%s505_s1 + $0x78] sm:$0xff]  ;;  %159 = vmatpush.bf16.msra.mxu0 %v381_v0  ;;  %v388_v3 = vld [vmem:[%s505_s1 + $0x70] sm:$0xff]  ;;  %v387_v6 = vld [vmem:[%s505_s1 + $0x68] sm:$0xff] }
   0x3   :  { %172 = vmatpush.bf16.msra.mxu1 %v389_v1  ;;  %v397_v4 = vld [vmem:[%s506_s2 + $0x38] sm:$0xff]  ;;  %v396_v7 = vld [vmem:[%s506_s2 + $0x30] sm:$0xff]  ;;  %v378_v8 = vld [vmem:[%s505_s1 + $0x20] sm:$0xff] }
   0x4   :  { %260 = vmatpush.bf16.msra.mxu2 %v397_v4  ;;  %v386_v9 = vld [vmem:[%s505_s1 + $0x60] sm:$0xff]  ;;  %v395_v10 = vld [vmem:[%s506_s2 + $0x28] sm:$0xff]  ;;  %v377_v11 = vld [vmem:[%s505_s1 + $0x18] sm:$0xff] }
   0x5   :  { %v385_v12 = vld [vmem:[%s505_s1 + $0x58] sm:$0xff]  ;;  %v394_v13 = vld [vmem:[%s506_s2 + $0x20] sm:$0xff]  ;;  %v376_v14 = vld [vmem:[%s505_s1 + $0x10] sm:$0xff] }
   0x6   :  { %160 = vmatpush.bf16.msra.mxu0 %v380_v2  ;;  %v384_v15 = vld [vmem:[%s505_s1 + $0x50] sm:$0xff]  ;;  %v393_v16 = vld [vmem:[%s506_s2 + $0x18] sm:$0xff]  ;;  %v375_v17 = vld [vmem:[%s505_s1 + $0x8] sm:$0xff] }
   0x7   :  { %173 = vmatpush.bf16.msra.mxu1 %v388_v3  ;;  %v383_v18 = vld [vmem:[%s505_s1 + $0x48] sm:$0xff]  ;;  %v23_v19 = vld [vmem:[%s507_s0] sm:$0xff]  ;;  %v392_v20 = vld [vmem:[%s506_s2 + $0x10] sm:$0xff] }
   0x8   :  { %261 = vmatpush.bf16.msra.mxu2 %v396_v7  ;;  %v57_v21 = vunpack.c.l.b16 %v23_v19  ;;  %v58_v22 = vunpack.c.h.b16 %v23_v19  ;;  %v374_v23 = vld [vmem:[%s505_s1] sm:$0xff]  ;;  %v391_v25 = vld [vmem:[%s506_s2 + $0x8] sm:$0xff] }
   0x9   :  { %v382_v24 = vld [vmem:[%s505_s1 + $0x40] sm:$0xff] }
   0xa   :  { %161 = vmatpush.bf16.msra.mxu0 %v379_v5  ;;  %v59_v26 = vpack.c.b16 %v57_v21, %v57_v21  ;;  %v60_v27 = vpack.c.b16 %v58_v22, %v58_v22  ;;  %v390_v28 = vld [vmem:[%s506_s2] sm:$0xff] }
   0xb   :  { %174 = vmatpush.bf16.msra.mxu1 %v387_v6  ;;  %v398_v35 = vld [vmem:[%s508_s3] ss:$0 sm:$0xff] }
   0xc   :  { %262 = vmatpush.bf16.msra.mxu2 %v395_v10 }
   0xe   :  { %162 = vmatpush.bf16.msra.mxu0 %v378_v8 }
   0xf   :  { %175 = vmatpush.bf16.msra.mxu1 %v386_v9 }
  0x10   :  { %263 = vmatpush.bf16.msra.mxu2 %v394_v13 }
  0x12   :  { %163 = vmatpush.bf16.msra.mxu0 %v377_v11 }
  0x13   :  { %176 = vmatpush.bf16.msra.mxu1 %v385_v12 }
  0x14   :  { %264 = vmatpush.bf16.msra.mxu2 %v393_v16 }
  0x16   :  { %164 = vmatpush.bf16.msra.mxu0 %v376_v14 }
  0x17   :  { %177 = vmatpush.bf16.msra.mxu1 %v384_v15 }
  0x18   :  { %265 = vmatpush.bf16.msra.mxu2 %v392_v20 }
  0x1a   :  { %165 = vmatpush.bf16.msra.mxu0 %v375_v17 }
  0x1b   :  { %178 = vmatpush.bf16.msra.mxu1 %v383_v18 }
  0x1c   :  { %266 = vmatpush.bf16.msra.mxu2 %v391_v25 }
  0x1e   :  { %166 = vmatpush.bf16.msra.mxu0 %v374_v23 }
  0x1f   :  { %179 = vmatpush.bf16.msra.mxu1 %v382_v24 }
  0x20   :  { %267 = vmatpush.bf16.msra.mxu2 %v390_v28 }
  0x21   :  { %167 = vmatmul.bf16.vlgmr.msra.gmra.mxu0 %v59_v26 }
  0x22   :  { %180 = vmatmul.bf16.vlgmr.msra.gmra.mxu1 %v60_v27 }
  0x9e   :  { %v168_v29 = vpop.f32.mrf.mxu0 }
  0x9f   :  { %v181_v30 = vpop.f32.mrf.mxu1 }
  0xa0   :  { %v182_v31 = vadd.f32 %v181_v30, %v168_v29 }
  0xa2   :  { %v191_v32 = vpack.c.bf16 %v182_v31, %v182_v31 }
  0xa4   :  { %268 = vmatmul.bf16.vlgmr.msra.gmra.mxu2 %v191_v32 }
  0xa6   :  { %v170_v33 = vpop.f32.mrf.mxu0 }
  0xa7   :  { %v183_v34 = vpop.f32.mrf.mxu1 }
 0x127   :  { %v269_v36 = vpop.f32.mrf.mxu2 }
 0x128   :  { %v270_v37 = vadd.f32 %v398_v35, %v269_v36 }
 0x12a   :  { %273 = vst [vmem:[%s509_s4] sm:$0xff] %v270_v37 }
 0x12f   :  { %v271_v38 = vpop.f32.mrf.mxu2 }

</bundles_post_ra>
